<compile_context>
chip_gen: v7x
topology: tpu7x:2x2x1
jax: 0.10.0
libtpu: 0.0.40
codegen_flags: <defaults>
</compile_context>

<pallas_src>
import jax
import jax.numpy as jnp
from jax.experimental import pallas as pl
from jax.experimental.pallas import tpu as pltpu


def _round_up(x, m):
    return ((x + m - 1) // m) * m


def _head_kernel(cls_ref, w_ref, b_ref, o_ref):
    """sigmoid(cls @ W + b) for one batch tile.

    cls_ref: (tb, D)   CLS-token activations (only seq-0 rows ever reach VMEM)
    w_ref:   (D, Cp)   classifier weight, transposed and lane-padded
    b_ref:   (1, Cp)   classifier bias, lane-padded, f32
    o_ref:   (tb, Cp)  sigmoid(cls @ W + b)
    """
    logits = jnp.dot(cls_ref[...], w_ref[...],
                     preferred_element_type=jnp.float32)     # MXU, f32 accumulate
    logits = logits + b_ref[...].astype(jnp.float32)         # one vreg broadcast/tile
    o_ref[...] = jax.nn.sigmoid(logits).astype(o_ref.dtype)  # EUP, f32


def hierarchical_classifier_head(last_hidden_state, weight_t, bias, *, block_b=128):
    """Pallas wrapper: CLS extract (wrapper-side slice) + linear + sigmoid.

    last_hidden_state: (B, S, D)
    weight_t:          (D, C)   nn.Linear weight, stored transposed for x @ W
    bias:              (C,)
    returns logits:    (B, C) float32
    """
    B, S, D = last_hidden_state.shape
    Dw, C = weight_t.shape
    assert Dw == D

    # (1) CLS-only: never DMA the full [B, S, D] tensor into the kernel.
    cls = last_hidden_state[:, 0, :]                          # (B, D)

    # (2) Lane-dense class dim (unmasked stores, full MXU output columns).
    Cp = _round_up(max(C, 128), 128)
    # (3) Sublane-aligned batch tile; tile over batch for pipelining / dual-TC.
    tb = min(block_b, _round_up(B, 8))
    Bp = _round_up(B, tb)

    cls_p = jnp.zeros((Bp, D), cls.dtype).at[:B, :].set(cls)
    w_p = jnp.zeros((D, Cp), weight_t.dtype).at[:, :C].set(weight_t)
    b_p = jnp.zeros((1, Cp), jnp.float32).at[0, :C].set(bias.astype(jnp.float32))

    out = pl.pallas_call(
        _head_kernel,
        out_shape=jax.ShapeDtypeStruct((Bp, Cp), jnp.float32),
        grid=(Bp // tb,),
        in_specs=[
            pl.BlockSpec((tb, D), lambda i: (i, 0)),     # CLS rows: tiled over batch
            pl.BlockSpec((D, Cp), lambda i: (0, 0)),     # weight: resident, 1 DMA
            pl.BlockSpec((1, Cp), lambda i: (0, 0)),     # bias:   resident, 1 DMA
        ],
        out_specs=pl.BlockSpec((tb, Cp), lambda i: (i, 0)),
        compiler_params=pltpu.CompilerParams(
            dimension_semantics=("parallel",),           # megacore-shardable on v7x
            vmem_limit_bytes=32 * 1024 * 1024,           # explicit; tiny working set
        ),
    )(cls_p, w_p, b_p)

    # Drop batch padding and padded class columns (padded cols read sigmoid(0)=0.5).
    return out[:B, :C]


class TransformerWithHierarchicalClassifierJAX:
    """Thin parameter container mirroring the relevant bits of the PyTorch module."""

    def __init__(self, embedding_dim=32, num_hierarchy_nodes=16,
                 weight_t=None, bias=None):
        self.embedding_dim = embedding_dim
        self.input_dim = embedding_dim            # use_bilstm = False
        self.num_classes = num_hierarchy_nodes    # == len(uid_to_dimension)
        # HierarchicalClassifier default: nn.Linear with zero-initialized weight
        # and bias (nn.init.zeros_).  Stored transposed as [D, C] for x @ W.
        if weight_t is None:
            weight_t = jnp.zeros((self.input_dim, self.num_classes), jnp.float32)
        if bias is None:
            bias = jnp.zeros((self.num_classes,), jnp.float32)
        self.weight_t = weight_t
        self.bias = bias

    def forward(self, last_hidden_state):
        # labels path / loss not exercised (labels forced to None in forward()).
        return hierarchical_classifier_head(last_hidden_state, self.weight_t, self.bias)


if __name__ == "__main__":
    B, S, D = 2, 8, 32           # batch, seq, hidden (small synthetic shapes)
    C = 16                       # number of hierarchy nodes (len(uid_to_dimension))

    key = jax.random.PRNGKey(0)
    k_h, k_w, k_b = jax.random.split(key, 3)

    # Synthetic stand-in for the backbone's last_hidden_state.
    last_hidden_state = jax.random.normal(k_h, (B, S, D), dtype=jnp.float32)

    # --- Test 1: non-trivial weights, exercises CLS indexing + matmul + bias +
    # sigmoid against a pure-JAX reference (zero weights would only test 0.5). ---
    weight_t = 0.1 * jax.random.normal(k_w, (D, C), dtype=jnp.float32)
    bias = 0.1 * jax.random.normal(k_b, (C,), dtype=jnp.float32)
    model = TransformerWithHierarchicalClassifierJAX(
        embedding_dim=D, num_hierarchy_nodes=C, weight_t=weight_t, bias=bias)

    logits = model.forward(last_hidden_state)
    logits = jax.block_until_ready(logits)

    cls = last_hidden_state[:, 0, :]
    ref = jax.nn.sigmoid(cls @ weight_t + bias)
    assert logits.shape == (B, C)
    assert jnp.allclose(logits, ref, atol=1e-5, rtol=1e-5), "mismatch vs reference"

    # --- Test 2: module's default zero-init (as in the PyTorch __init__). ---
    model0 = TransformerWithHierarchicalClassifierJAX(embedding_dim=D,
                                                      num_hierarchy_nodes=C)
    logits0 = jax.block_until_ready(model0.forward(last_hidden_state))
    assert jnp.allclose(logits0, 0.5, atol=1e-6), "zero-init head should give 0.5"

    print("KERNEL_OK")
</pallas_src>

<mosaic_0001>
module attributes {stable_mosaic.version = 11 : i64} {
  func.func @_head_kernel(%arg0: i32, %arg1: memref<8x32xf32, #tpu.memory_space<vmem>>, %arg2: memref<32x128xf32, #tpu.memory_space<vmem>>, %arg3: memref<1x128xf32, #tpu.memory_space<vmem>>, %arg4: memref<8x128xf32, #tpu.memory_space<vmem>>) attributes {dimension_semantics = [#tpu.dimension_semantics<parallel>], iteration_bounds = array<i64: 1>, scalar_prefetch = 0 : i64, scratch_operands = 0 : i64, tpu.core_type = #tpu.core_type<tc>, window_params = [{transform_indices = @transform_0, window_bounds = array<i64: 8, 32>}, {pipeline_mode = #tpu.pipeline_mode<synchronous>, transform_indices = @transform_1, window_bounds = array<i64: 32, 128>}, {pipeline_mode = #tpu.pipeline_mode<synchronous>, transform_indices = @transform_2, window_bounds = array<i64: 1, 128>}, {transform_indices = @transform_3, window_bounds = array<i64: 8, 128>}]} {
    %c0 = arith.constant 0 : index
    %c0_0 = arith.constant 0 : index
    %0 = vector.load %arg1[%c0, %c0_0] : memref<8x32xf32, #tpu.memory_space<vmem>>, vector<8x32xf32>
    %c0_1 = arith.constant 0 : index
    %c0_2 = arith.constant 0 : index
    %1 = vector.load %arg2[%c0_1, %c0_2] : memref<32x128xf32, #tpu.memory_space<vmem>>, vector<32x128xf32>
    %cst = arith.constant dense<0.000000e+00> : vector<8x128xf32>
    %2 = tpu.matmul %0, %1, %cst {dimension_numbers = #tpu.dot_dimension_numbers<[1], [0], [0], [1], [0, 0, 1, 1], [], []>} : vector<8x32xf32>, vector<32x128xf32>, vector<8x128xf32> -> vector<8x128xf32>
    %c0_3 = arith.constant 0 : index
    %c0_4 = arith.constant 0 : index
    %3 = vector.load %arg3[%c0_3, %c0_4] : memref<1x128xf32, #tpu.memory_space<vmem>>, vector<1x128xf32>
    %4 = vector.broadcast %3 : vector<1x128xf32> to vector<8x128xf32>
    %5 = arith.addf %2, %4 : vector<8x128xf32>
    %6 = arith.negf %5 : vector<8x128xf32>
    %7 = math.exp %6 : vector<8x128xf32>
    %cst_5 = arith.constant 1.000000e+00 : f32
    %8 = vector.broadcast %cst_5 : f32 to vector<8x128xf32>
    %9 = arith.addf %8, %7 : vector<8x128xf32>
    %10 = arith.divf %8, %9 : vector<8x128xf32>
    %c0_6 = arith.constant 0 : index
    %c0_7 = arith.constant 0 : index
    %11 = vector.load %arg4[%c0_6, %c0_7] : memref<8x128xf32, #tpu.memory_space<vmem>>, vector<8x128xf32>
    tpu.vector_store %arg4[%c0_6, %c0_7], %10 {strides = array<i32>} : memref<8x128xf32, #tpu.memory_space<vmem>>, vector<8x128xf32>,
    return
  }
  func.func @transform_0(%arg0: i32) -> (i32, i32) {
    %c0_i32 = arith.constant 0 : i32
    %c0_i32_0 = arith.constant 0 : i32
    return %arg0, %c0_i32 : i32, i32
  }
  func.func @transform_1(%arg0: i32) -> (i32, i32) {
    %c0_i32 = arith.constant 0 : i32
    %c0_i32_0 = arith.constant 0 : i32
    %c0_i32_1 = arith.constant 0 : i32
    return %c0_i32, %c0_i32_0 : i32, i32
  }
  func.func @transform_2(%arg0: i32) -> (i32, i32) {
    %c0_i32 = arith.constant 0 : i32
    %c0_i32_0 = arith.constant 0 : i32
    %c0_i32_1 = arith.constant 0 : i32
    return %c0_i32, %c0_i32_0 : i32, i32
  }
  func.func @transform_3(%arg0: i32) -> (i32, i32) {
    %c0_i32 = arith.constant 0 : i32
    %c0_i32_0 = arith.constant 0 : i32
    return %arg0, %c0_i32 : i32, i32
  }
}

</mosaic_0001>

<bundles_post_ra>
// kernel: tpu_custom_call.1
= control target key start
LH: loop header
LB: loop body
LE: loop exit
PB: predicated region body
PF: predicated region fallthrough
CT: control target
= control target key end

     0   :  { %8 = vsyncpa [#allocation3], 0  ;;  %s333_s0 = inlined_call_operand.hbm [shape: f32[8,32], index: 0, kind: input, shape index: {}]   ;;  %s334_s1 = inlined_call_operand.hbm [shape: f32[32,128], index: 1, kind: input, shape index: {}]   ;;  %s335_s2 = inlined_call_operand.vmem [shape: f32[1,128], index: 2, kind: input, shape index: {}]   ;;  %s336_s3 = inlined_call_operand.hbm [shape: f32[8,128], index: 3, kind: output, shape index: {}]  }
   0x1   :  { %9 = vsyncpa [#allocation6], 0 }
   0x2   :  { %10 = vsyncpa [#allocation4], 0  ;;  %s259_s12 = smov [#allocation2]   ;;  %s260_s14 = smov [#allocation5]  }
   0x3   :  { %s17_s13 = sshll.u32 %s259_s12, 4  ;;  %s26_s15 = sshll.u32 %s260_s14, 4  ;;  %s18_s13 = int_to_ptr.vmem [resolvable:$true] %s17_s13  ;;  %s287_s15 = int_to_ptr.vmem [resolvable:$true] %s26_s15 }
   0x4   :  { %s187_s18 = scalar_lea.hbm %s333_s0, 128 }
   0x5   :  { %p188_p0 = scmp.ne.s32.totalorder %s333_s0, %s187_s18  ;;  %p191_p1 = scmp.lt.u32.totalorder %s187_s18, %s333_s0 }
   0x7   :  { %p193_p2 = pnand %p191_p1, %p188_p0 }
   0x9   :  { %196 = shalt.err (!%p193_p2)
}
   0xa   :  { %s197_s23 = scalar_lea.vmem %s18_s13, 128  ;;  %p202_p4 = scmp.lt.s32.totalorder %s18_s13, %s18_s13 }
   0xb   :  { %p198_p3 = scmp.ne.s32.totalorder %s18_s13, %s197_s23  ;;  %p203_p5 = scmp.lt.s32.totalorder %s197_s23, %s197_s23 }
   0xd   :  { %p204_p6 = por %p203_p5, %p202_p4 }
   0xf   :  { %p205_p7 = pnand %p204_p6, %p198_p3 }
  0x11   :  { %208 = shalt.err (!%p205_p7)
}
  0x12   :  { %20 = dma.hbm_to_vmem [thread:$0]  %s333_s0, 128, %s18_s13, [#allocation3]  }
  0x13   :  { %s209_s28 = scalar_lea.hbm %s334_s1, 512 }
  0x14   :  { %p210_p8 = scmp.ne.s32.totalorder %s334_s1, %s209_s28  ;;  %p213_p9 = scmp.lt.u32.totalorder %s209_s28, %s334_s1 }
  0x16   :  { %p215_p10 = pnand %p213_p9, %p210_p8 }
  0x18   :  { %218 = shalt.err (!%p215_p10)
}
  0x19   :  { %s219_s6 = scalar_lea.vmem %s287_s15, 512  ;;  %p224_p12 = scmp.lt.s32.totalorder %s287_s15, %s287_s15 }
  0x1a   :  { %p220_p11 = scmp.ne.s32.totalorder %s287_s15, %s219_s6  ;;  %p225_p13 = scmp.lt.s32.totalorder %s219_s6, %s219_s6 }
  0x1c   :  { %p226_p0 = por %p225_p13, %p224_p12 }
  0x1e   :  { %p227_p1 = pnand %p226_p0, %p220_p11 }
  0x20   :  { %230 = shalt.err (!%p227_p1)
}
  0x21   :  { %s261_s0 = smov 128   ;;  %s262_s7 = smov 8  }
  0x22   :  { %32 = dma.hbm_to_vmem [thread:$0]  %s334_s1, 512, %s287_s15, [#allocation6], %s261_s0, %s261_s0, %s262_s7  }
  0x23   :  { %253 = dma.done.wait [#allocation3], 128  }
  0x24   :  { %254 = vsyncadd [#allocation3], 4294967168 }
  0x25   :  { %255 = dma.done.wait [#allocation6], 512  }
  0x26   :  { %256 = vsyncadd [#allocation6], 4294966784  ;;  %v263_v0 = vmov 0.0|0.0   ;;  %vm264_vm0 = vmmov 0   ;;  %v265_v1 = vmov 0.0   ;;  %v42_v2 = vld [vmem:[#allocation5] sm:$0xff] }
  0x27   :  { %169 = vmatprep.subr.bf16.mxu0 %v263_v0  ;;  %166 = vmatprep.mubr.msk.f32.mxu0 %vm264_vm0, %v265_v1  ;;  %v43_v3 = vld [vmem:[#allocation5 + $0x8] sm:$0xff]  ;;  %v44_v4 = vld [vmem:[#allocation5 + $0x10] sm:$0xff]  ;;  %v45_v6 = vld [vmem:[#allocation5 + $0x18] sm:$0xff]  ;;  %vm53_vm1 = vcmask 261120   ;;  %s266_s11 = smov [#allocation7]  }
  0x28   :  { %v170_v5 = vpack.c.bf16 %v43_v3, %v42_v2  ;;  %v173_v7 = vpack.c.bf16 %v45_v6, %v44_v4  ;;  %v41_v8 = vld [vmem:[#allocation2] sm:$0xff]  ;;  %s140_s12 = sshll.u32 %s266_s11, 4  ;;  %s141_s12 = int_to_ptr.vmem [resolvable:$true] %s140_s12 }
  0x29   :  { %v150_v9 = vld [vmem:[%s335_s2] ss:$0 sm:$0xff]  ;;  %s231_s13 = scalar_lea.vmem %s141_s12, 128  ;;  %p236_p3 = scmp.lt.s32.totalorder %s141_s12, %s141_s12 }
  0x2a   :  { %171 = vmatpush3.bf16.msra.mxu0 %v170_v5  ;;  %p232_p2 = scmp.ne.s32.totalorder %s141_s12, %s231_s13  ;;  %p237_p4 = scmp.lt.s32.totalorder %s231_s13, %s231_s13 }
  0x2b   :  { %172 = vmatprep.subr.bf16.mxu0 %v263_v0 }
  0x2c   :  { %p238_p5 = por %p237_p4, %p236_p3 }
  0x2e   :  { %174 = vmatpush3.bf16.msra.mxu0 %v173_v7  ;;  %p239_p6 = pnand %p238_p5, %p232_p2 }
  0x31   :  { %167 = vmatmul.mubr.msk.f32.vlgmr.msra.gmra.mrb[0].mxu0 %vm53_vm1, %v41_v8 }
 0x104   :  { %v123_v10 = vpop.f32.mrb[0].mxu0 }
 0x105   :  { %v124_v11 = vadd.f32 %v150_v9, %v123_v10  ;;  %v168_v12 = vpop.f32.mrb[1].mxu0 }
 0x107   :  { %v152_v13 = vmul.f32 -1.442695, %v124_v11 }
 0x109   :  { %183 = vpow2.f32 %v152_v13 }
 0x113   :  { %v184_v14 = vpop.eup %183 }
 0x114   :  { %v130_v15 = vadd.f32 1.0, %v184_v14 }
 0x116   :  { %185 = vrcp.f32 %v130_v15 }
 0x120   :  { %v186_v16 = vpop.eup %185 }
 0x121   :  { %133 = vst [vmem:[#allocation7] sm:$0xff] %v186_v16 }
 0x122   :  { %242 = shalt.err (!%p239_p6)
}
 0x123   :  { %s243_s15 = scalar_lea.hbm %s336_s3, 128 }
 0x124   :  { %p244_p7 = scmp.ne.s32.totalorder %s336_s3, %s243_s15  ;;  %p247_p8 = scmp.lt.u32.totalorder %s243_s15, %s336_s3 }
 0x126   :  { %p249_p9 = pnand %p247_p8, %p244_p7 }
 0x128   :  { %252 = shalt.err (!%p249_p9)
}
 0x129   :  { %143 = dma.vmem_to_hbm [thread:$0]  %s141_s12, 128, %s336_s3, [#allocation4]  }
 0x12a   :  { %257 = dma.done.wait [#allocation4], 128  }
 0x12b   :  { %258 = vsyncadd [#allocation4], 4294967168 }
 0x12c   :  { %147 = vsyncpa [#allocation3], 1 }
 0x12d   :  { %148 = vsyncpa [#allocation6], 1 }
 0x12e   :  { %149 = vsyncpa [#allocation4], 1 }

</bundles_post_ra>
